<compile_context>
chip_gen: v7x
topology: tpu7x:2x2x1
jax: 0.10.0
libtpu: 0.0.40
codegen_flags: <defaults>
</compile_context>

<pallas_src>
import functools

import jax
import jax.numpy as jnp
from jax.experimental import pallas as pl
from jax.experimental.pallas import tpu as pltpu


# ----------------------------------------------------------------------------
# small helpers
# ----------------------------------------------------------------------------
def _round_up(x, m):
    return (x + m - 1) // m * m


def _cdiv(a, b):
    return -(-a // b)


def _vmem_capacity_bytes():
    """Per-core VMEM capacity; conservative fallback if the query is unavailable."""
    try:
        info = pltpu.get_tpu_info()
        cap = getattr(info, "vmem_capacity_bytes", None)
        if cap:
            return int(cap)
    except Exception:
        pass
    return 64 << 20  # v7x per-TC budget — the most conservative real value


def _is_v5():
    try:
        return "v5" in jax.devices()[0].device_kind.lower()
    except Exception:
        return False


def _pick_batch_tile(B, tb, mult):
    """Balanced batch tiles (minimise last-tile padding); prefer >=2 grid steps
    so both v7x TensorCores get work (near-zero cost on single-TC v5e/v6e)."""
    n_tiles = _cdiv(B, tb)
    if n_tiles == 1 and B >= 2 * mult:
        n_tiles = 2
    tb_eff = _round_up(_cdiv(B, n_tiles), mult)
    n_tiles = _cdiv(B, tb_eff)
    return tb_eff, n_tiles * tb_eff


def _pick_feature_tile(dim, cap=512):
    """Largest multiple of 128 <= cap that divides dim (dim is a multiple of 128)."""
    if dim <= cap:
        return dim
    t = cap - (cap % 128)
    while dim % t:
        t -= 128
    return t


# ----------------------------------------------------------------------------
# one-time parameter preparation (padding + cast hoisted out of the call path)
# ----------------------------------------------------------------------------
def prepare_params(params, *, compute_dtype=jnp.bfloat16):
    """Pad every feature dim to a lane-dense multiple of 128 and cast the
    weights to the MXU compute dtype ONCE. Biases stay f32 (added to the f32
    accumulator). Zero padding keeps semantics exact: padded input columns hit
    zero weight rows, padded hidden columns get zero weight/bias (ReLU(0)=0),
    padded output columns are sliced off afterwards."""
    cdtype = jnp.dtype(compute_dtype)
    n_in, hidden = params["w1"].shape
    n_out = params["w4"].shape[1]
    n_in_p = _round_up(n_in, 128)
    h_p = _round_up(hidden, 128)
    n_out_p = _round_up(n_out, 128)

    def pad2(a, rows, cols, dtype):
        return jnp.pad(a, ((0, rows - a.shape[0]), (0, cols - a.shape[1]))).astype(dtype)

    arrays = dict(
        w1=pad2(params["w1"], n_in_p, h_p, cdtype),
        b1=pad2(params["b1"], 1, h_p, jnp.float32),
        w2=pad2(params["w2"], h_p, h_p, cdtype),
        b2=pad2(params["b2"], 1, h_p, jnp.float32),
        w3=pad2(params["w3"], h_p, h_p, cdtype),
        b3=pad2(params["b3"], 1, h_p, jnp.float32),
        w4=pad2(params["w4"], h_p, n_out_p, cdtype),
        b4=pad2(params["b4"], 1, n_out_p, jnp.float32),
    )
    meta = dict(n_in=n_in, hidden=hidden, n_out=n_out,
                n_in_p=n_in_p, h_p=h_p, n_out_p=n_out_p,
                compute_dtype=cdtype)
    return {"arrays": arrays, "meta": meta}


# ----------------------------------------------------------------------------
# fused kernel: whole 4-layer MLP per batch tile, weights resident in VMEM
# ----------------------------------------------------------------------------
def _ffn_fused_kernel(edtype, x_ref, w1_ref, b1_ref, w2_ref, b2_ref,
                      w3_ref, b3_ref, w4_ref, b4_ref, o_ref):
    cdtype = w1_ref.dtype  # MXU compute dtype (bf16 or f32)

    def bias_relu(acc_f32, b_ref):
        # f32 MXU accumulator -> epilogue dtype (bf16 on v6e/v7x, f32 on v5e)
        h = acc_f32.astype(edtype) + b_ref[...].astype(edtype)
        return jnp.maximum(h, 0).astype(cdtype)

    # x arrives as f32; the cast to the MXU dtype is a VPU op hidden under the MXU.
    x = x_ref[...].astype(cdtype)
    h = bias_relu(jnp.dot(x, w1_ref[...], preferred_element_type=jnp.float32), b1_ref)
    h = bias_relu(jnp.dot(h, w2_ref[...], preferred_element_type=jnp.float32), b2_ref)
    h = bias_relu(jnp.dot(h, w3_ref[...], preferred_element_type=jnp.float32), b3_ref)
    h = jnp.dot(h, w4_ref[...], preferred_element_type=jnp.float32) + b4_ref[...]
    o_ref[...] = h.astype(o_ref.dtype)


def _build_fused(tb_eff, n_steps, n_in_p, h_p, n_out_p, edtype, out_dtype,
                 weight_buffers, vmem_limit, cost):
    kernel = functools.partial(_ffn_fused_kernel, edtype)

    def w_spec(shape):
        # Grid-invariant weights/biases (index_map always (0,0)); single-buffer
        # them only when VMEM is tight.
        if weight_buffers == 1:
            return pl.BlockSpec(shape, lambda i: (0, 0), pipeline_mode=pl.Buffered(1))
        return pl.BlockSpec(shape, lambda i: (0, 0))

    return pl.pallas_call(
        kernel,
        out_shape=jax.ShapeDtypeStruct((n_steps * tb_eff, n_out_p), out_dtype),
        grid_spec=pltpu.PrefetchScalarGridSpec(
            num_scalar_prefetch=0,
            grid=(n_steps,),
            in_specs=[
                pl.BlockSpec((tb_eff, n_in_p), lambda i: (i, 0)),   # x tile (f32)
                w_spec((n_in_p, h_p)), w_spec((1, h_p)),            # w1, b1
                w_spec((h_p, h_p)), w_spec((1, h_p)),               # w2, b2
                w_spec((h_p, h_p)), w_spec((1, h_p)),               # w3, b3
                w_spec((h_p, n_out_p)), w_spec((1, n_out_p)),       # w4, b4
            ],
            out_specs=pl.BlockSpec((tb_eff, n_out_p), lambda i: (i, 0)),
        ),
        compiler_params=pltpu.CompilerParams(
            dimension_semantics=("parallel",),
            vmem_limit_bytes=vmem_limit),
        cost_estimate=cost,
    )


# ----------------------------------------------------------------------------
# tiled fallback: per-layer K/N-tiled matmul (+bias, +ReLU) with f32 accumulator
# (selected when the resident weight footprint would not fit this chip's VMEM)
# ----------------------------------------------------------------------------
def _linear_kernel(relu, x_ref, w_ref, b_ref, o_ref, acc_ref):
    @pl.when(pl.program_id(2) == 0)
    def _():
        acc_ref[...] = jnp.zeros_like(acc_ref)

    acc_ref[...] += jnp.dot(x_ref[...].astype(w_ref.dtype), w_ref[...],
                            preferred_element_type=jnp.float32)

    @pl.when(pl.program_id(2) == pl.num_programs(2) - 1)
    def _():
        h = acc_ref[...] + b_ref[...]
        if relu:
            h = jnp.maximum(h, 0.0)
        o_ref[...] = h.astype(o_ref.dtype)


def _linear_tiled(x_p, w_p, b_p, *, relu, out_dtype, tm, vmem_cap):
    M, K = x_p.shape
    N = w_p.shape[1]
    tk = _pick_feature_tile(K)
    tn = _pick_feature_tile(N)
    xbytes = jnp.dtype(x_p.dtype).itemsize
    cbytes = jnp.dtype(w_p.dtype).itemsize
    obytes = jnp.dtype(out_dtype).itemsize
    need = 2 * (tm * tk * xbytes + tk * tn * cbytes + tn * 4 + tm * tn * obytes)
    need += tm * tn * 4  # f32 accumulator scratch
    vmem_limit = min(max(int(need * 1.5) + (4 << 20), 16 << 20), int(vmem_cap * 0.9))

    return pl.pallas_call(
        functools.partial(_linear_kernel, relu),
        out_shape=jax.ShapeDtypeStruct((M, N), out_dtype),
        grid_spec=pltpu.PrefetchScalarGridSpec(
            num_scalar_prefetch=0,
            grid=(M // tm, N // tn, K // tk),
            in_specs=[
                pl.BlockSpec((tm, tk), lambda i, j, k: (i, k)),
                pl.BlockSpec((tk, tn), lambda i, j, k: (k, j)),
                pl.BlockSpec((1, tn), lambda i, j, k: (0, j)),
            ],
            out_specs=pl.BlockSpec((tm, tn), lambda i, j, k: (i, j)),
            scratch_shapes=[pltpu.VMEM((tm, tn), jnp.float32)],
        ),
        compiler_params=pltpu.CompilerParams(
            dimension_semantics=("parallel", "parallel", "arbitrary"),
            vmem_limit_bytes=vmem_limit),
    )(x_p, w_p, b_p)


# ----------------------------------------------------------------------------
# public wrapper
# ----------------------------------------------------------------------------
def feedforward_pallas(x, prep, *, tb=None, force_tiled=False):
    """x: [B, n_inputs] f32. prep: output of prepare_params()."""
    p = prep["arrays"]
    meta = prep["meta"]
    cdtype = meta["compute_dtype"]
    cbytes = cdtype.itemsize
    n_in, n_out = meta["n_in"], meta["n_out"]
    n_in_p, h_p, n_out_p = meta["n_in_p"], meta["h_p"], meta["n_out_p"]
    B = x.shape[0]
    assert x.shape[1] == n_in
    out_dtype = x.dtype

    vmem_cap = _vmem_capacity_bytes()
    if tb is None:
        # 512 on v5e/v6e (128 MiB VMEM), 256 on v7x (64 MiB/TC)
        tb = 512 if vmem_cap >= (96 << 20) else 256
    mult = 16 if cdtype == jnp.dtype(jnp.bfloat16) else 8
    tb_eff, B_p = _pick_batch_tile(B, max(tb, mult), mult)
    n_steps = B_p // tb_eff

    # Only the activations are padded per call (weights were padded once in
    # prepare_params). x stays f32; the MXU-dtype cast happens in-kernel.
    x_p = jnp.pad(x, ((0, B_p - B), (0, n_in_p - n_in)))

    # ---- footprint-based path selection (replaces the old try/except) ----
    w_bytes = (n_in_p * h_p + 2 * h_p * h_p + h_p * n_out_p) * cbytes
    b_bytes = (3 * h_p + n_out_p) * 4
    tile_bytes = 2 * tb_eff * (n_in_p + n_out_p) * 4      # double-buffered x/out tiles
    tmp_bytes = tb_eff * h_p * (3 * 4 + cbytes)           # in-kernel temporaries
    budget = int(vmem_cap * 0.85)
    need_single = int((w_bytes + b_bytes + tile_bytes + tmp_bytes) * 1.2) + (2 << 20)
    need_double = int((2 * (w_bytes + b_bytes) + tile_bytes + tmp_bytes) * 1.2) + (2 << 20)

    if force_tiled or need_single > budget:
        # Resident weights can't fit this generation's VMEM (e.g. wide hidden
        # on v7x): per-layer tiled matmuls keep the MXU fed instead.
        h = _linear_tiled(x_p, p["w1"], p["b1"], relu=True, out_dtype=cdtype,
                          tm=tb_eff, vmem_cap=vmem_cap)
        h = _linear_tiled(h, p["w2"], p["b2"], relu=True, out_dtype=cdtype,
                          tm=tb_eff, vmem_cap=vmem_cap)
        h = _linear_tiled(h, p["w3"], p["b3"], relu=True, out_dtype=cdtype,
                          tm=tb_eff, vmem_cap=vmem_cap)
        out_p = _linear_tiled(h, p["w4"], p["b4"], relu=False, out_dtype=out_dtype,
                              tm=tb_eff, vmem_cap=vmem_cap)
        return out_p[:B, :n_out]

    weight_buffers = 2 if need_double <= budget else 1
    vmem_limit = min(max(need_double if weight_buffers == 2 else need_single, 16 << 20),
                     int(vmem_cap * 0.92))

    # bf16 bias/ReLU epilogue on chips with bf16 VPUs (v6e/v7x); f32 on v5e.
    edtype = cdtype if (cdtype == jnp.dtype(jnp.bfloat16) and not _is_v5()) else jnp.float32

    cost = pl.CostEstimate(
        flops=2 * B_p * (n_in_p * h_p + 2 * h_p * h_p + h_p * n_out_p),
        transcendentals=0,
        bytes_accessed=int(B_p * n_in_p * 4 + w_bytes + b_bytes + B_p * n_out_p * 4),
    )

    call = _build_fused(tb_eff, n_steps, n_in_p, h_p, n_out_p, edtype,
                        out_dtype, weight_buffers, vmem_limit, cost)
    out_p = call(x_p, p["w1"], p["b1"], p["w2"], p["b2"],
                 p["w3"], p["b3"], p["w4"], p["b4"])
    return out_p[:B, :n_out]


# ----------------------------------------------------------------------------
# reference + synthetic init
# ----------------------------------------------------------------------------
def init_params(key, n_inputs, n_outputs, hidden):
    """Deterministic synthetic init matching nn.Linear parameter shapes."""
    ks = jax.random.split(key, 8)

    def linear(kw, kb, fan_in, fan_out):
        bound = 1.0 / jnp.sqrt(fan_in)
        # PyTorch stores weight as [out, in]; we keep the transposed [in, out].
        w = jax.random.uniform(kw, (fan_in, fan_out), jnp.float32, -bound, bound)
        b = jax.random.uniform(kb, (1, fan_out), jnp.float32, -bound, bound)
        return w, b

    w1, b1 = linear(ks[0], ks[1], n_inputs, hidden)
    w2, b2 = linear(ks[2], ks[3], hidden, hidden)
    w3, b3 = linear(ks[4], ks[5], hidden, hidden)
    w4, b4 = linear(ks[6], ks[7], hidden, n_outputs)
    return dict(w1=w1, b1=b1, w2=w2, b2=b2, w3=w3, b3=b3, w4=w4, b4=b4)


def feedforward_ref(x, p):
    h = jnp.maximum(x @ p["w1"] + p["b1"], 0.0)
    h = jnp.maximum(h @ p["w2"] + p["b2"], 0.0)
    h = jnp.maximum(h @ p["w3"] + p["b3"], 0.0)
    return h @ p["w4"] + p["b4"]


if __name__ == "__main__":
    key = jax.random.PRNGKey(0)
    k_x, k_p = jax.random.split(key)

    B, n_inputs, hidden, n_outputs = 16, 16, 32, 8
    x = jax.random.normal(k_x, (B, n_inputs), dtype=jnp.float32)
    params = init_params(k_p, n_inputs, n_outputs, hidden)
    ref = feedforward_ref(x, params)

    # Exact-arithmetic path (f32 compute) — tight tolerance.
    prep_f32 = prepare_params(params, compute_dtype=jnp.float32)
    out_f32 = jax.block_until_ready(feedforward_pallas(x, prep_f32))
    assert out_f32.shape == (B, n_outputs)
    assert jnp.allclose(out_f32, ref, atol=1e-5, rtol=1e-5)

    # bf16 MXU path (recommended on v6e/v7x) — looser tolerance (intentional
    # accuracy/perf trade: bf16 activations/weights, f32 accumulation).
    prep_bf16 = prepare_params(params, compute_dtype=jnp.bfloat16)
    out_bf16 = jax.block_until_ready(feedforward_pallas(x, prep_bf16))
    assert out_bf16.shape == (B, n_outputs)
    assert jnp.allclose(out_bf16, ref, atol=5e-2, rtol=5e-2)

    # Exercise the tiled fallback path (used automatically when the resident
    # weight footprint would not fit VMEM, e.g. wide MLPs on v7x's 64 MiB/TC).
    out_tiled = jax.block_until_ready(
        feedforward_pallas(x, prep_f32, force_tiled=True))
    assert out_tiled.shape == (B, n_outputs)
    assert jnp.allclose(out_tiled, ref, atol=1e-5, rtol=1e-5)

    print("KERNEL_OK")
</pallas_src>

<mosaic_0001>
module attributes {stable_mosaic.version = 11 : i64} {
  func.func @_ffn_fused_kernel(%arg0: i32, %arg1: memref<8x128xf32, #tpu.memory_space<vmem>>, %arg2: memref<128x128xf32, #tpu.memory_space<vmem>>, %arg3: memref<1x128xf32, #tpu.memory_space<vmem>>, %arg4: memref<128x128xf32, #tpu.memory_space<vmem>>, %arg5: memref<1x128xf32, #tpu.memory_space<vmem>>, %arg6: memref<128x128xf32, #tpu.memory_space<vmem>>, %arg7: memref<1x128xf32, #tpu.memory_space<vmem>>, %arg8: memref<128x128xf32, #tpu.memory_space<vmem>>, %arg9: memref<1x128xf32, #tpu.memory_space<vmem>>, %arg10: memref<8x128xf32, #tpu.memory_space<vmem>>) attributes {dimension_semantics = [#tpu.dimension_semantics<parallel>], iteration_bounds = array<i64: 2>, scalar_prefetch = 0 : i64, scratch_operands = 0 : i64, tpu.core_type = #tpu.core_type<tc>, window_params = [{transform_indices = @transform_0, window_bounds = array<i64: 8, 128>}, {pipeline_mode = #tpu.pipeline_mode<synchronous>, transform_indices = @transform_1, window_bounds = array<i64: 128, 128>}, {pipeline_mode = #tpu.pipeline_mode<synchronous>, transform_indices = @transform_2, window_bounds = array<i64: 1, 128>}, {pipeline_mode = #tpu.pipeline_mode<synchronous>, transform_indices = @transform_3, window_bounds = array<i64: 128, 128>}, {pipeline_mode = #tpu.pipeline_mode<synchronous>, transform_indices = @transform_4, window_bounds = array<i64: 1, 128>}, {pipeline_mode = #tpu.pipeline_mode<synchronous>, transform_indices = @transform_5, window_bounds = array<i64: 128, 128>}, {pipeline_mode = #tpu.pipeline_mode<synchronous>, transform_indices = @transform_6, window_bounds = array<i64: 1, 128>}, {pipeline_mode = #tpu.pipeline_mode<synchronous>, transform_indices = @transform_7, window_bounds = array<i64: 128, 128>}, {pipeline_mode = #tpu.pipeline_mode<synchronous>, transform_indices = @transform_8, window_bounds = array<i64: 1, 128>}, {transform_indices = @transform_9, window_bounds = array<i64: 8, 128>}]} {
    %c0 = arith.constant 0 : index
    %c0_0 = arith.constant 0 : index
    %0 = vector.load %arg1[%c0, %c0_0] : memref<8x128xf32, #tpu.memory_space<vmem>>, vector<8x128xf32>
    %c0_1 = arith.constant 0 : index
    %c0_2 = arith.constant 0 : index
    %1 = vector.load %arg2[%c0_1, %c0_2] : memref<128x128xf32, #tpu.memory_space<vmem>>, vector<128x128xf32>
    %cst = arith.constant dense<0.000000e+00> : vector<8x128xf32>
    %2 = tpu.matmul %0, %1, %cst {dimension_numbers = #tpu.dot_dimension_numbers<[1], [0], [0], [1], [0, 0, 1, 1], [], []>} : vector<8x128xf32>, vector<128x128xf32>, vector<8x128xf32> -> vector<8x128xf32>
    %c0_3 = arith.constant 0 : index
    %c0_4 = arith.constant 0 : index
    %3 = vector.load %arg3[%c0_3, %c0_4] : memref<1x128xf32, #tpu.memory_space<vmem>>, vector<1x128xf32>
    %4 = vector.broadcast %3 : vector<1x128xf32> to vector<8x128xf32>
    %5 = arith.addf %2, %4 : vector<8x128xf32>
    %cst_5 = arith.constant 0.000000e+00 : f32
    %6 = vector.broadcast %cst_5 : f32 to vector<8x128xf32>
    %7 = arith.maximumf %5, %6 : vector<8x128xf32>
    %c0_6 = arith.constant 0 : index
    %c0_7 = arith.constant 0 : index
    %8 = vector.load %arg4[%c0_6, %c0_7] : memref<128x128xf32, #tpu.memory_space<vmem>>, vector<128x128xf32>
    %cst_8 = arith.constant dense<0.000000e+00> : vector<8x128xf32>
    %9 = tpu.matmul %7, %8, %cst_8 {dimension_numbers = #tpu.dot_dimension_numbers<[1], [0], [0], [1], [0, 0, 1, 1], [], []>} : vector<8x128xf32>, vector<128x128xf32>, vector<8x128xf32> -> vector<8x128xf32>
    %c0_9 = arith.constant 0 : index
    %c0_10 = arith.constant 0 : index
    %10 = vector.load %arg5[%c0_9, %c0_10] : memref<1x128xf32, #tpu.memory_space<vmem>>, vector<1x128xf32>
    %11 = vector.broadcast %10 : vector<1x128xf32> to vector<8x128xf32>
    %12 = arith.addf %9, %11 : vector<8x128xf32>
    %cst_11 = arith.constant 0.000000e+00 : f32
    %13 = vector.broadcast %cst_11 : f32 to vector<8x128xf32>
    %14 = arith.maximumf %12, %13 : vector<8x128xf32>
    %c0_12 = arith.constant 0 : index
    %c0_13 = arith.constant 0 : index
    %15 = vector.load %arg6[%c0_12, %c0_13] : memref<128x128xf32, #tpu.memory_space<vmem>>, vector<128x128xf32>
    %cst_14 = arith.constant dense<0.000000e+00> : vector<8x128xf32>
    %16 = tpu.matmul %14, %15, %cst_14 {dimension_numbers = #tpu.dot_dimension_numbers<[1], [0], [0], [1], [0, 0, 1, 1], [], []>} : vector<8x128xf32>, vector<128x128xf32>, vector<8x128xf32> -> vector<8x128xf32>
    %c0_15 = arith.constant 0 : index
    %c0_16 = arith.constant 0 : index
    %17 = vector.load %arg7[%c0_15, %c0_16] : memref<1x128xf32, #tpu.memory_space<vmem>>, vector<1x128xf32>
    %18 = vector.broadcast %17 : vector<1x128xf32> to vector<8x128xf32>
    %19 = arith.addf %16, %18 : vector<8x128xf32>
    %cst_17 = arith.constant 0.000000e+00 : f32
    %20 = vector.broadcast %cst_17 : f32 to vector<8x128xf32>
    %21 = arith.maximumf %19, %20 : vector<8x128xf32>
    %c0_18 = arith.constant 0 : index
    %c0_19 = arith.constant 0 : index
    %22 = vector.load %arg8[%c0_18, %c0_19] : memref<128x128xf32, #tpu.memory_space<vmem>>, vector<128x128xf32>
    %cst_20 = arith.constant dense<0.000000e+00> : vector<8x128xf32>
    %23 = tpu.matmul %21, %22, %cst_20 {dimension_numbers = #tpu.dot_dimension_numbers<[1], [0], [0], [1], [0, 0, 1, 1], [], []>} : vector<8x128xf32>, vector<128x128xf32>, vector<8x128xf32> -> vector<8x128xf32>
    %c0_21 = arith.constant 0 : index
    %c0_22 = arith.constant 0 : index
    %24 = vector.load %arg9[%c0_21, %c0_22] : memref<1x128xf32, #tpu.memory_space<vmem>>, vector<1x128xf32>
    %25 = vector.broadcast %24 : vector<1x128xf32> to vector<8x128xf32>
    %26 = arith.addf %23, %25 : vector<8x128xf32>
    %c0_23 = arith.constant 0 : index
    %c0_24 = arith.constant 0 : index
    %27 = vector.load %arg10[%c0_23, %c0_24] : memref<8x128xf32, #tpu.memory_space<vmem>>, vector<8x128xf32>
    tpu.vector_store %arg10[%c0_23, %c0_24], %26 {strides = array<i32>} : memref<8x128xf32, #tpu.memory_space<vmem>>, vector<8x128xf32>,
    return
  }
  func.func @transform_0(%arg0: i32) -> (i32, i32) {
    %c0_i32 = arith.constant 0 : i32
    %c0_i32_0 = arith.constant 0 : i32
    return %arg0, %c0_i32 : i32, i32
  }
  func.func @transform_1(%arg0: i32) -> (i32, i32) {
    %c0_i32 = arith.constant 0 : i32
    %c0_i32_0 = arith.constant 0 : i32
    %c0_i32_1 = arith.constant 0 : i32
    return %c0_i32, %c0_i32_0 : i32, i32
  }
  func.func @transform_2(%arg0: i32) -> (i32, i32) {
    %c0_i32 = arith.constant 0 : i32
    %c0_i32_0 = arith.constant 0 : i32
    %c0_i32_1 = arith.constant 0 : i32
    return %c0_i32, %c0_i32_0 : i32, i32
  }
  func.func @transform_3(%arg0: i32) -> (i32, i32) {
    %c0_i32 = arith.constant 0 : i32
    %c0_i32_0 = arith.constant 0 : i32
    %c0_i32_1 = arith.constant 0 : i32
    return %c0_i32, %c0_i32_0 : i32, i32
  }
  func.func @transform_4(%arg0: i32) -> (i32, i32) {
    %c0_i32 = arith.constant 0 : i32
    %c0_i32_0 = arith.constant 0 : i32
    %c0_i32_1 = arith.constant 0 : i32
    return %c0_i32, %c0_i32_0 : i32, i32
  }
  func.func @transform_5(%arg0: i32) -> (i32, i32) {
    %c0_i32 = arith.constant 0 : i32
    %c0_i32_0 = arith.constant 0 : i32
    %c0_i32_1 = arith.constant 0 : i32
    return %c0_i32, %c0_i32_0 : i32, i32
  }
  func.func @transform_6(%arg0: i32) -> (i32, i32) {
    %c0_i32 = arith.constant 0 : i32
    %c0_i32_0 = arith.constant 0 : i32
    %c0_i32_1 = arith.constant 0 : i32
    return %c0_i32, %c0_i32_0 : i32, i32
  }
  func.func @transform_7(%arg0: i32) -> (i32, i32) {
    %c0_i32 = arith.constant 0 : i32
    %c0_i32_0 = arith.constant 0 : i32
    %c0_i32_1 = arith.constant 0 : i32
    return %c0_i32, %c0_i32_0 : i32, i32
  }
  func.func @transform_8(%arg0: i32) -> (i32, i32) {
    %c0_i32 = arith.constant 0 : i32
    %c0_i32_0 = arith.constant 0 : i32
    %c0_i32_1 = arith.constant 0 : i32
    return %c0_i32, %c0_i32_0 : i32, i32
  }
  func.func @transform_9(%arg0: i32) -> (i32, i32) {
    %c0_i32 = arith.constant 0 : i32
    %c0_i32_0 = arith.constant 0 : i32
    return %arg0, %c0_i32 : i32, i32
  }
}

</mosaic_0001>

<bundles_post_ra>
// kernel: tpu_custom_call.1
= control target key start
LH: loop header
LB: loop body
LE: loop exit
PB: predicated region body
PF: predicated region fallthrough
CT: control target
= control target key end

     0   :  { %s1955_s0 = inlined_call_operand.hbm [shape: f32[16,128], index: 0, kind: input, shape index: {}]   ;;  %s1956_s1 = inlined_call_operand.hbm [shape: f32[128,128], index: 1, kind: input, shape index: {}]   ;;  %s1957_s2 = inlined_call_operand.vmem [shape: f32[1,128], index: 2, kind: input, shape index: {}]   ;;  %s1958_s3 = inlined_call_operand.hbm [shape: f32[128,128], index: 3, kind: input, shape index: {}]   ;;  %s1959_s4 = inlined_call_operand.vmem [shape: f32[1,128], index: 4, kind: input, shape index: {}]   ;;  %s1960_s5 = inlined_call_operand.hbm [shape: f32[128,128], index: 5, kind: input, shape index: {}]   ;;  %s1961_s6 = inlined_call_operand.vmem [shape: f32[1,128], index: 6, kind: input, shape index: {}]   ;;  %s1962_s7 = inlined_call_operand.hbm [shape: f32[128,128], index: 7, kind: input, shape index: {}]   ;;  %s1963_s8 = inlined_call_operand.vmem [shape: f32[1,128], index: 8, kind: input, shape index: {}]   ;;  %s1964_s9 = inlined_call_operand.hbm [shape: f32[16,128], index: 9, kind: output, shape index: {}]  }
   0x1   :  { %1969 = sst [smem:[#allocation16_spill]] %s1956_s1 }
   0x2   :  { %1970 = sst [smem:[#allocation17_spill]] %s1964_s9 }
   0x3   :  { %14 = vsyncpa [#allocation3], 0 }
   0x4   :  { %16 = vsyncpa [#allocation3 + $0x1], 0 }
   0x5   :  { %17 = vsyncpa [#allocation6], 0 }
   0x6   :  { %18 = vsyncpa [#allocation9], 0 }
   0x7   :  { %19 = vsyncpa [#allocation4], 0 }
   0x8   :  { %21 = vsyncpa [#allocation4 + $0x1], 0  ;;  %s1604_s30 = smov 0   ;;  %s1606_s10 = smov 0  }
   0x9   :  { %s1608_s11 = smov 0   ;;  %s1610_s12 = smov 0  }
   0xa LB: > { %s1543_s13 = smov [#allocation5]   ;;  %s1625_s15 = sadd.s32 4294967295, %s1541_s12   ;;  %s1541_s12 = sphi %s1610_s12, %s1993_s12   ;;  %s1537_s11 = sphi %s1608_s11, %s1992_s11   ;;  %s1533_s10 = sphi %s1606_s10, %s1991_s10   ;;  %s1529_s30 = sphi %s1604_s30, %s1990_s30  }
   0xb   : > { %s264_s14 = sshll.u32 %s1543_s13, 4  ;;  %p906_p0 = scmp.ge.s32.totalorder %s1541_s12, 1  ;;  %s1630_s14 = int_to_ptr.vmem [resolvable:$true] %s264_s14 }
   0xc   : > { %p1966_p1 = scmp.eq.s32.totalorder %s1625_s15, 0  ;;  %p252_p2 = scmp.lt.s32.totalorder %s1541_s12, 3 }
   0xd   : > { %s1544_s17 = smov [#allocation8]   ;;  %s1545_s20 = smov [#allocation7]  }
   0xe   : > { %p1632_p3 = pnand %p906_p0, %p252_p2  ;;  %s296_s18 = sshll.u32 %s1544_s17, 4  ;;  %s1645_s18 = int_to_ptr.vmem [resolvable:$true] %s296_s18 }
   0xf   : > { %s280_s21 = sshll.u32 %s1545_s20, 4  ;;  %s1973_s1 = sld [smem:[#allocation16_spill]]  ;;  %s1647_s21 = int_to_ptr.vmem [resolvable:$true] %s280_s21 }
  0x10   : > { %s1971_s16 = scalar_select %p1632_p3, 1, 0 }
  0x11   : > { %p1253_p5 = pneg %p1632_p3 }
  0x13   : > { %p1641_p6 = pnand %p1253_p5, %p1966_p1 }
  0x15   : > { %s1325_s24 = scalar_lea.hbm %s1973_s1, 2048  ;;  %p1657_p8 = pneg %p1641_p6 }
  0x16   : > { %p1326_p7 = scmp.ne.s32.totalorder %s1973_s1, %s1325_s24  ;;  %p1332_p11 = scmp.lt.u32.totalorder %s1325_s24, %s1973_s1 }
  0x18   : > { %p1328_p9 = pnand %p1657_p8, %p1326_p7 }
  0x1a   : > { %p1329_p10 = pneg %p1328_p9 }
  0x1c   : > { %p1334_p12 = pnand %p1332_p11, %p1329_p10 }
  0x1e   : > { %1337 = shalt.err (!%p1334_p12)
}
  0x1f   : > { %s1338_s13 = scalar_lea.vmem %s1630_s14, 2048  ;;  %p1346_p5 = scmp.lt.s32.totalorder %s1630_s14, %s1630_s14 }
  0x20   : > { %p1339_p13 = scmp.ne.s32.totalorder %s1630_s14, %s1338_s13  ;;  %p1347_p4 = scmp.lt.s32.totalorder %s1338_s13, %s1338_s13 }
  0x22   : > { %p1341_p0 = pnand %p1339_p13, %p1657_p8  ;;  %p1348_p7 = por %p1347_p4, %p1346_p5 }
  0x24   : > { %p1342_p2 = pneg %p1341_p0 }
  0x26   : > { %p1349_p9 = pnand %p1348_p7, %p1342_p2 }
  0x28   : > { %1352 = shalt.err (!%p1349_p9)
}
  0x29   : > { %s1546_s17 = smov 128   ;;  %s1547_s20 = smov 8  }
  0x2a   : > { %1256 = dma.hbm_to_vmem [thread:$0]  (!%p1641_p6), %s1973_s1, 2048, %s1630_s14, [#allocation6], %s1546_s17, %s1546_s17, %s1547_s20  }
  0x2b   : > { %s1353_s26 = scalar_lea.hbm %s1960_s5, 2048 }
  0x2c   : > { %p1354_p4 = scmp.ne.s32.totalorder %s1960_s5, %s1353_s26  ;;  %p1360_p12 = scmp.lt.u32.totalorder %s1353_s26, %s1960_s5 }
  0x2e   : > { %p1356_p10 = pnand %p1354_p4, %p1657_p8 }
  0x30   : > { %p1357_p11 = pneg %p1356_p10 }
  0x32   : > { %p1362_p13 = pnand %p1360_p12, %p1357_p11 }
  0x34   : > { %1365 = shalt.err (!%p1362_p13)
}
  0x35   : > { %s1366_s14 = scalar_lea.vmem %s1645_s18, 2048  ;;  %p1374_p7 = scmp.lt.s32.totalorder %s1645_s18, %s1645_s18 }
  0x36   : > { %p1367_p0 = scmp.ne.s32.totalorder %s1645_s18, %s1366_s14  ;;  %p1375_p9 = scmp.lt.s32.totalorder %s1366_s14, %s1366_s14 }
  0x38   : > { %p1369_p2 = pnand %p1367_p0, %p1657_p8  ;;  %p1376_p4 = por %p1375_p9, %p1374_p7 }
  0x3a   : > { %p1370_p5 = pneg %p1369_p2 }
  0x3c   : > { %p1377_p10 = pnand %p1376_p4, %p1370_p5 }
  0x3e   : > { %1380 = shalt.err (!%p1377_p10)
}
  0x3f   : > { %1262 = dma.hbm_to_vmem [thread:$0]  (!%p1641_p6), %s1960_s5, 2048, %s1645_s18, [#allocation9], %s1546_s17, %s1546_s17, %s1547_s20  }
  0x40   : > { %s1381_s25 = scalar_lea.hbm %s1958_s3, 2048 }
  0x41   : > { %p1382_p11 = scmp.ne.s32.totalorder %s1958_s3, %s1381_s25  ;;  %p1388_p0 = scmp.lt.u32.totalorder %s1381_s25, %s1958_s3 }
  0x43   : > { %p1384_p12 = pnand %p1382_p11, %p1657_p8 }
  0x45   : > { %p1385_p13 = pneg %p1384_p12 }
  0x47   : > { %p1390_p2 = pnand %p1388_p0, %p1385_p13 }
  0x49   : > { %1393 = shalt.err (!%p1390_p2)
}
  0x4a   : > { %s1394_s18 = scalar_lea.vmem %s1647_s21, 2048  ;;  %p1402_p4 = scmp.lt.s32.totalorder %s1647_s21, %s1647_s21 }
  0x4b   : > { %p1395_p5 = scmp.ne.s32.totalorder %s1647_s21, %s1394_s18  ;;  %p1403_p10 = scmp.lt.s32.totalorder %s1394_s18, %s1394_s18 }
  0x4d   : > { %p1397_p7 = pnand %p1395_p5, %p1657_p8  ;;  %p1404_p11 = por %p1403_p10, %p1402_p4 }
  0x4f   : > { %p1398_p9 = pneg %p1397_p7 }
  0x51   : > { %p1405_p12 = pnand %p1404_p11, %p1398_p9 }
  0x53   : > { %1408 = shalt.err (!%p1405_p12)
}
  0x54   : > { %1259 = dma.hbm_to_vmem [thread:$0]  (!%p1641_p6), %s1958_s3, 2048, %s1647_s21, [#allocation6], %s1546_s17, %s1546_s17, %s1547_s20  }
  0x55   : > { %s1548_s22 = smov [#allocation10]   ;;  %s1409_s26 = scalar_lea.hbm %s1962_s7, 2048 }
  0x56   : > { %s312_s23 = sshll.u32 %s1548_s22, 4  ;;  %p1410_p13 = scmp.ne.s32.totalorder %s1962_s7, %s1409_s26  ;;  %s313_s23 = int_to_ptr.vmem [resolvable:$true] %s312_s23 }
  0x57   : > { %p1416_p5 = scmp.lt.u32.totalorder %s1409_s26, %s1962_s7 }
  0x58   : > { %p1412_p0 = pnand %p1410_p13, %p1657_p8 }
  0x5a   : > { %p1413_p2 = pneg %p1412_p0 }
  0x5c   : > { %p1418_p7 = pnand %p1416_p5, %p1413_p2 }
  0x5e   : > { %1421 = shalt.err (!%p1418_p7)
}
  0x5f   : > { %s1422_s21 = scalar_lea.vmem %s313_s23, 2048  ;;  %p1430_p11 = scmp.lt.s32.totalorder %s313_s23, %s313_s23 }
  0x60   : > { %p1423_p9 = scmp.ne.s32.totalorder %s313_s23, %s1422_s21  ;;  %p1431_p12 = scmp.lt.s32.totalorder %s1422_s21, %s1422_s21 }
  0x62   : > { %p1425_p4 = pnand %p1423_p9, %p1657_p8  ;;  %p1432_p1 = por %p1431_p12, %p1430_p11 }
  0x64   : > { %p1426_p10 = pneg %p1425_p4 }
  0x66   : > { %p1433_p3 = pnand %p1432_p1, %p1426_p10 }
  0x68   : > { %1436 = shalt.err (!%p1433_p3)
}
  0x69   : > { %1265 = dma.hbm_to_vmem [thread:$0]  (!%p1641_p6), %s1962_s7, 2048, %s313_s23, [#allocation9], %s1546_s17, %s1546_s17, %s1547_s20  }
  0x6a   : > { %s905_s19 = sadd.s32 4294967294, %s1541_s12   ;;  %s1756_s27 = sadd.s32 1, %s1541_s12  }
  0x6b   : > { %s31_s22 = ssub.s32 %s1541_s12, %s1756_s27  ;;  %s34_s24 = sadd.s32 1, %s1537_s11 }
  0x6c   : > { %p32_p1 = scmp.eq.s32.totalorder %s31_s22, 0  ;;  %p41_p3 = scmp.ne.s32.totalorder %s1537_s11, %s1533_s10 }
  0x6d   : > { %p42_p8 = scmp.eq.s32.totalorder %s1541_s12, 0  ;;  %p47_p13 = scmp.ne.s32.totalorder %s1533_s10, %s1529_s30 }
  0x6e   : > { %s1767_s25 = scalar_select %p32_p1, %s1537_s11, %s34_s24  }
  0x6f   : > { %p1769_p0 = por %p42_p8, %p41_p3  ;;  %p1976_p2 = scmp.eq.s32.totalorder %s1625_s15, 0 }
  0x70   : > { %p239_p5 = scmp.eq.s32.totalorder %s1625_s15, 1  ;;  %p245_p7 = scmp.eq.s32.totalorder %s905_s19, 1 }
  0x71   : > { %p1775_p6 = por %p1976_p2, %p47_p13  ;;  %p1278_p9 = scmp.lt.s32.totalorder %s1541_s12, 2 }
  0x72   : > { %s329_s20 = sand.u32 1, %s1537_s11   ;;  %p1782_p4 = por %p239_p5, %p41_p3 }
  0x73   : > { %p1786_p10 = por %p245_p7, %p47_p13  ;;  %s912_s29 = sshll.u32 %s329_s20, 3 }
  0x74   : > { %s1978_s23 = scalar_select %p1782_p4, 1, 0 }
  0x75   : > { %s1979_s28 = scalar_select %p1786_p10, 1, 0 }
  0x76   : > { %s913_s13 = sshll.u32 %s1541_s12, 7  ;;  %s333_s9 = scalar_lea.vmem [#allocation2], %s912_s29 }
  0x77   : > { %s1794_s14 = scalar_lea.hbm %s1955_s0, %s913_s13  ;;  %s340_s19 = sshll.u32 %s333_s9, 4  ;;  %s1796_s19 = int_to_ptr.vmem [resolvable:$true] %s340_s19 }
  0x78   : > { %p1800_p11 = pnand %p1278_p9, %p1769_p0  ;;  %s330_s24 = scalar_lea.sflag [#allocation3], %s329_s20 }
  0x79   : > { %s1437_s1 = scalar_lea.hbm %s1794_s14, 128  ;;  %s1442_s18 = scalar_lea.hbm %s1955_s0, 256 }
  0x7a   : > { %p1438_p12 = scmp.ne.s32.totalorder %s1794_s14, %s1437_s1  ;;  %p1439_p1 = pneg %p1800_p11 }
  0x7b   : > { %p1443_p13 = scmp.lt.u32.totalorder %s1794_s14, %s1955_s0  ;;  %p1444_p0 = scmp.lt.u32.totalorder %s1442_s18, %s1437_s1 }
  0x7c   : > { %p1440_p3 = pnand %p1439_p1, %p1438_p12  ;;  %p1446_p5 = scmp.lt.u32.totalorder %s1437_s1, %s1794_s14 }
  0x7d   : > { %p1445_p2 = por %p1444_p0, %p1443_p13 }
  0x7e   : > { %p1441_p8 = pneg %p1440_p3 }
  0x7f   : > { %p1447_p7 = por %p1446_p5, %p1445_p2 }
  0x81   : > { %p1448_p9 = pnand %p1447_p7, %p1441_p8 }
  0x83   : > { %1451 = shalt.err (!%p1448_p9)
}
  0x84   : > { %s1452_s20 = scalar_lea.vmem %s1796_s19, 128  ;;  %s1549_s9 = smov [#allocation2]  }
  0x85   : > { %p1453_p12 = scmp.ne.s32.totalorder %s1796_s19, %s1452_s20  ;;  %s1457_s29 = sshll.u32 %s1549_s9, 4  ;;  %s1458_s29 = int_to_ptr.vmem [resolvable:$false] %s1457_s29 }
  0x86   : > { %s1459_s13 = scalar_lea.vmem %s1458_s29, 256  ;;  %p1460_p4 = scmp.lt.s32.totalorder %s1796_s19, %s1458_s29 }
  0x87   : > { %p1455_p3 = pnand %p1453_p12, %p1439_p1  ;;  %p1461_p13 = scmp.lt.s32.totalorder %s1459_s13, %s1452_s20 }
  0x89   : > { %p1456_p10 = pneg %p1455_p3  ;;  %p1462_p0 = por %p1461_p13, %p1460_p4 }
  0x8b   : > { %p1463_p2 = pnand %p1462_p0, %p1456_p10 }
  0x8d   : > { %1466 = shalt.err (!%p1463_p2)
}
  0x8e   : > { %1269 = dma.hbm_to_vmem [thread:$0]  (!%p1800_p11), %s1794_s14, 128, %s1796_s19, %s330_s24  }
  0x8f   : > { %p1981_p8 = scmp.ne.s32.totalorder %s1971_s16, 0 }
  0x90   : > { %s1832_s1 = sand.u32 (!%p1981_p8), 1, %s1533_s10  }
  0x91   : > { %349 = sbr.rel (%p1981_p8) target bundleno = 1069 (0x42d), region = 56  ;;  %s915_s18 = sshll.u32 (!%p1981_p8), %s1832_s1, 3 }
  0x92   : > { %s352_s26 = scalar_lea.sflag (!%p1981_p8), [#allocation3], %s1832_s1  ;;  %s1838_s21 = scalar_lea.vmem (!%p1981_p8), [#allocation2], %s915_s18 }
  0x98   : > { %1512 = dma.done.wait (%p1775_p6), %s352_s26, 128  }
  0x99   : > { %1514 = vsyncadd (%p1775_p6), %s352_s26, 4294967168  ;;  %p1982_p4 = scmp.eq.s32.totalorder %s1625_s15, 0 }
  0x9b   : > { %1516 = dma.done.wait (%p1982_p4), [#allocation6], 4096   ;;  %p1983_p10 = pmov %p1982_p4 }
  0x9c   : > { %p1984_p11 = pmov %p1982_p4 }
  0x9d   : > { %1518 = vsyncadd (%p1983_p10), [#allocation6], 4294963200 }
  0x9e   : > { %1520 = dma.done.wait (%p1984_p11), [#allocation9], 4096   ;;  %p1985_p1 = pmov %p1982_p4 }
  0x9f   : > { %v1550_v0 = vmov 0.0|0.0   ;;  %vm1551_vm0 = vmmov 0   ;;  %v1552_v1 = vmov 0.0   ;;  %v407_v2 = vld [vmem:[#allocation5] sm:$0xff]  ;;  %v408_v3 = vld [vmem:[#allocation5 + $0x8] sm:$0xff]  ;;  %v409_v4 = vld [vmem:[#allocation5 + $0x10] sm:$0xff] }
  0xa0   : > { %1522 = vsyncadd (%p1985_p1), [#allocation9], 4294963200  ;;  %1137 = vmatprep.subr.bf16.mxu0 %v1550_v0  ;;  %1029 = vmatprep.mubr.msk.f32.mxu0 %vm1551_vm0, %v1552_v1  ;;  %v1138_v5 = vpack.c.bf16 %v408_v3, %v407_v2  ;;  %v410_v6 = vld [vmem:[#allocation5 + $0x18] sm:$0xff]  ;;  %v411_v8 = vld [vmem:[#allocation5 + $0x20] sm:$0xff]  ;;  %s926_s29 = sshll.u32 %s1625_s15, 7  ;;  %s405_s13 = scalar_lea.vmem [#allocation11], %s915_s18 }
  0xa1   : > { %1161 = vmatprep.subr.bf16.mxu1 %v1550_v0  ;;  %1064 = vmatprep.mubr.msk.f32.mxu1 %vm1551_vm0, %v1552_v1  ;;  %v1141_v7 = vpack.c.bf16 %v410_v6, %v409_v4  ;;  %v412_v9 = vld [vmem:[#allocation5 + $0x28] sm:$0xff]  ;;  %v501_v10 = vld [vmem:[#allocation7] sm:$0xff]  ;;  %v503_v12 = vld [vmem:[#allocation7 + $0x10] sm:$0xff]  ;;  %s797_s26 = sshll.u32 %s405_s13, 4  ;;  %s1986_s17 = sld [smem:[#allocation17_spill]]  ;;  %s1913_s26 = int_to_ptr.vmem [resolvable:$true] %s797_s26 }
  0xa2   : > { %1139 = vmatpush3.bf16.msra.mxu0 %v1138_v5  ;;  %v502_v11 = vld [vmem:[#allocation7 + $0x8] sm:$0xff]  ;;  %v504_v13 = vld [vmem:[#allocation7 + $0x18] sm:$0xff]  ;;  %v1144_v14 = vpack.c.bf16 %v412_v9, %v411_v8  ;;  %v413_v16 = vld [vmem:[#allocation5 + $0x30] sm:$0xff]  ;;  %s784_s19 = scalar_lea.sflag [#allocation4], %s1832_s1  ;;  %s1467_s22 = scalar_lea.vmem %s1913_s26, 128 }
  0xa3   : > { %1140 = vmatprep.subr.bf16.mxu0 %v1550_v0  ;;  %v1162_v15 = vpack.c.bf16 %v502_v11, %v501_v10  ;;  %v414_v17 = vld [vmem:[#allocation5 + $0x38] sm:$0xff]  ;;  %v1165_v18 = vpack.c.bf16 %v504_v13, %v503_v12  ;;  %v505_v19 = vld [vmem:[#allocation7 + $0x20] sm:$0xff]  ;;  %v506_v20 = vld [vmem:[#allocation7 + $0x28] sm:$0xff]  ;;  %p1468_p6 = scmp.ne.s32.totalorder %s1913_s26, %s1467_s22  ;;  %p1987_p5 = scmp.ne.s32.totalorder %s1978_s23, 0 }
  0xa4   : > { %v1147_v21 = vpack.c.bf16 %v414_v17, %v413_v16  ;;  %v415_v22 = vld [vmem:[#allocation5 + $0x40] sm:$0xff]  ;;  %v416_v23 = vld [vmem:[#allocation5 + $0x48] sm:$0xff]  ;;  %v1168_v24 = vpack.c.bf16 %v506_v20, %v505_v19  ;;  %v507_v25 = vld [vmem:[#allocation7 + $0x30] sm:$0xff]  ;;  %s1553_s15 = smov [#allocation11]  }
  0xa5   : > { %1163 = vmatpush3.bf16.msra.mxu1 %v1162_v15  ;;  %v508_v26 = vld [vmem:[#allocation7 + $0x38] sm:$0xff]  ;;  %v1150_v27 = vpack.c.bf16 %v416_v23, %v415_v22  ;;  %v417_v28 = vld [vmem:[#allocation5 + $0x50] sm:$0xff]  ;;  %v509_v31 = vld [vmem:[#allocation7 + $0x40] sm:$0xff]  ;;  %p1469_p7 = pnand %p1468_p6, %p1987_p5  ;;  %s1471_s18 = sshll.u32 %s1553_s15, 4  ;;  %s1472_s18 = int_to_ptr.vmem [resolvable:$false] %s1471_s18 }
  0xa6   : > { %1142 = vmatpush3.bf16.msra.mxu0 %v1141_v7  ;;  %1164 = vmatprep.subr.bf16.mxu1 %v1550_v0  ;;  %v418_v29 = vld [vmem:[#allocation5 + $0x58] sm:$0xff]  ;;  %v1171_v30 = vpack.c.bf16 %v508_v26, %v507_v25  ;;  %v510_v32 = vld [vmem:[#allocation7 + $0x48] sm:$0xff]  ;;  %v419_v34 = vld [vmem:[#allocation5 + $0x60] sm:$0xff]  ;;  %s1473_s24 = scalar_lea.vmem %s1472_s18, 256  ;;  %p1474_p12 = scmp.lt.s32.totalorder %s1913_s26, %s1472_s18 }
  0xa7   : > { %1143 = vmatprep.subr.bf16.mxu0 %v1550_v0  ;;  %v1153_v33 = vpack.c.bf16 %v418_v29, %v417_v28  ;;  %v420_v35 = vld [vmem:[#allocation5 + $0x68] sm:$0xff]  ;;  %v1174_v36 = vpack.c.bf16 %v510_v32, %v509_v31  ;;  %v511_v37 = vld [vmem:[#allocation7 + $0x50] sm:$0xff]  ;;  %v512_v38 = vld [vmem:[#allocation7 + $0x58] sm:$0xff]  ;;  %s1911_s14 = scalar_lea.hbm %s1986_s17, %s926_s29  ;;  %p1470_p9 = pneg %p1469_p7 }
  0xa8   : > { %v1156_v39 = vpack.c.bf16 %v420_v35, %v419_v34  ;;  %v421_v40 = vld [vmem:[#allocation5 + $0x70] sm:$0xff]  ;;  %v422_v41 = vld [vmem:[#allocation5 + $0x78] sm:$0xff]  ;;  %v1177_v42 = vpack.c.bf16 %v512_v38, %v511_v37  ;;  %v513_v43 = vld [vmem:[#allocation7 + $0x60] sm:$0xff]  ;;  %p1475_p3 = scmp.lt.s32.totalorder %s1473_s24, %s1467_s22 }
  0xa9   : > { %1166 = vmatpush3.bf16.msra.mxu1 %v1165_v18  ;;  %v514_v44 = vld [vmem:[#allocation7 + $0x68] sm:$0xff]  ;;  %v1159_v45 = vpack.c.bf16 %v422_v41, %v421_v40  ;;  %v406_v47 = vld [vmem:[%s1838_s21] sm:$0xff]  ;;  %v595_v51 = vld [vmem:[#allocation8] sm:$0xff] }
  0xaa   : > { %1145 = vmatpush3.bf16.msra.mxu0 %v1144_v14  ;;  %1167 = vmatprep.subr.bf16.mxu1 %v1550_v0  ;;  %v1180_v46 = vpack.c.bf16 %v514_v44, %v513_v43  ;;  %v515_v48 = vld [vmem:[#allocation7 + $0x70] sm:$0xff]  ;;  %v516_v49 = vld [vmem:[#allocation7 + $0x78] sm:$0xff]  ;;  %v596_v52 = vld [vmem:[#allocation8 + $0x8] sm:$0xff]  ;;  %p1476_p13 = por %p1475_p3, %p1474_p12 }
  0xab   : > { %1146 = vmatprep.subr.bf16.mxu0 %v1550_v0  ;;  %v1183_v50 = vpack.c.bf16 %v516_v49, %v515_v48  ;;  %v597_v53 = vld [vmem:[#allocation8 + $0x10] sm:$0xff]  ;;  %v1186_v54 = vpack.c.bf16 %v596_v52, %v595_v51  ;;  %v598_v55 = vld [vmem:[#allocation8 + $0x18] sm:$0xff]  ;;  %v599_v57 = vld [vmem:[#allocation8 + $0x20] sm:$0xff] }
  0xac   : > { %v1189_v56 = vpack.c.bf16 %v598_v55, %v597_v53  ;;  %v600_v58 = vld [vmem:[#allocation8 + $0x28] sm:$0xff]  ;;  %v601_v60 = vld [vmem:[#allocation8 + $0x30] sm:$0xff]  ;;  %v602_v61 = vld [vmem:[#allocation8 + $0x38] sm:$0xff]  ;;  %p1477_p0 = pnand %p1476_p13, %p1470_p9 }
  0xad   : > { %1169 = vmatpush3.bf16.msra.mxu1 %v1168_v24  ;;  %v1192_v59 = vpack.c.bf16 %v600_v58, %v599_v57  ;;  %v1195_v62 = vpack.c.bf16 %v602_v61, %v601_v60  ;;  %v603_v63 = vld [vmem:[#allocation8 + $0x40] sm:$0xff]  ;;  %v604_v2 = vld [vmem:[#allocation8 + $0x48] sm:$0xff]  ;;  %v605_v4 = vld [vmem:[#allocation8 + $0x50] sm:$0xff] }
  0xae   : > { %1148 = vmatpush3.bf16.msra.mxu0 %v1147_v21  ;;  %1170 = vmatprep.subr.bf16.mxu1 %v1550_v0  ;;  %v1198_v3 = vpack.c.bf16 %v604_v2, %v603_v63  ;;  %v606_v5 = vld [vmem:[#allocation8 + $0x58] sm:$0xff]  ;;  %v607_v7 = vld [vmem:[#allocation8 + $0x60] sm:$0xff]  ;;  %v608_v8 = vld [vmem:[#allocation8 + $0x68] sm:$0xff] }
  0xaf   : > { %1149 = vmatprep.subr.bf16.mxu0 %v1550_v0  ;;  %v1201_v6 = vpack.c.bf16 %v606_v5, %v605_v4  ;;  %v1204_v9 = vpack.c.bf16 %v608_v8, %v607_v7  ;;  %v921_v10 = vld [vmem:[%s1957_s2] ss:$0 sm:$0xff]  ;;  %v610_v16 = vld [vmem:[#allocation8 + $0x78] sm:$0xff]  ;;  %v689_v18 = vld [vmem:[#allocation10] sm:$0xff] }
  0xb0   : > { %v609_v15 = vld [vmem:[#allocation8 + $0x70] sm:$0xff]  ;;  %v690_v19 = vld [vmem:[#allocation10 + $0x8] sm:$0xff]  ;;  %v692_v22 = vld [vmem:[#allocation10 + $0x18] sm:$0xff] }
  0xb1   : > { %1172 = vmatpush3.bf16.msra.mxu1 %v1171_v30  ;;  %v1207_v17 = vpack.c.bf16 %v610_v16, %v609_v15  ;;  %v691_v20 = vld [vmem:[#allocation10 + $0x10] sm:$0xff]  ;;  %v1210_v21 = vpack.c.bf16 %v690_v19, %v689_v18  ;;  %v693_v24 = vld [vmem:[#allocation10 + $0x20] sm:$0xff]  ;;  %v694_v25 = vld [vmem:[#allocation10 + $0x28] sm:$0xff] }
  0xb2   : > { %1151 = vmatpush3.bf16.msra.mxu0 %v1150_v27  ;;  %1173 = vmatprep.subr.bf16.mxu1 %v1550_v0  ;;  %v1213_v23 = vpack.c.bf16 %v692_v22, %v691_v20  ;;  %v1216_v26 = vpack.c.bf16 %v694_v25, %v693_v24  ;;  %v696_v27 = vld [vmem:[#allocation10 + $0x38] sm:$0xff]  ;;  %v697_v29 = vld [vmem:[#allocation10 + $0x40] sm:$0xff]  ;;  %v698_v30 = vld [vmem:[#allocation10 + $0x48] sm:$0xff] }
  0xb3   : > { %1152 = vmatprep.subr.bf16.mxu0 %v1550_v0  ;;  %v1222_v31 = vpack.c.bf16 %v698_v30, %v697_v29  ;;  %v699_v32 = vld [vmem:[#allocation10 + $0x50] sm:$0xff]  ;;  %v701_v35 = vld [vmem:[#allocation10 + $0x60] sm:$0xff]  ;;  %v704_v44 = vld [vmem:[#allocation10 + $0x78] sm:$0xff] }
  0xb4   : > { %v922_v38 = vld [vmem:[%s1959_s4] ss:$0 sm:$0xff] }
  0xb5   : > { %1175 = vmatpush3.bf16.msra.mxu1 %v1174_v36  ;;  %v702_v36 = vld [vmem:[#allocation10 + $0x68] sm:$0xff]  ;;  %v703_v43 = vld [vmem:[#allocation10 + $0x70] sm:$0xff] }
  0xb6   : > { %1154 = vmatpush3.bf16.msra.mxu0 %v1153_v33  ;;  %1176 = vmatprep.subr.bf16.mxu1 %v1550_v0  ;;  %v700_v33 = vld [vmem:[#allocation10 + $0x58] sm:$0xff]  ;;  %v1228_v37 = vpack.c.bf16 %v702_v36, %v701_v35 }
  0xb7   : > { %1155 = vmatprep.subr.bf16.mxu0 %v1550_v0  ;;  %v1225_v34 = vpack.c.bf16 %v700_v33, %v699_v32 }
  0xb9   : > { %1178 = vmatpush3.bf16.msra.mxu1 %v1177_v42 }
  0xba   : > { %1157 = vmatpush3.bf16.msra.mxu0 %v1156_v39  ;;  %1179 = vmatprep.subr.bf16.mxu1 %v1550_v0 }
  0xbb   : > { %1158 = vmatprep.subr.bf16.mxu0 %v1550_v0 }
  0xbd   : > { %1181 = vmatpush3.bf16.msra.mxu1 %v1180_v46  ;;  %v923_v46 = vld [vmem:[%s1961_s6] ss:$0 sm:$0xff] }
  0xbe   : > { %1160 = vmatpush3.bf16.msra.mxu0 %v1159_v45  ;;  %1182 = vmatprep.subr.bf16.mxu1 %v1550_v0  ;;  %v1231_v45 = vpack.c.bf16 %v704_v44, %v703_v43 }
  0xbf   : > { %1185 = vmatprep.subr.bf16.mxu0 %v1550_v0 }
  0xc1   : > { %1030 = vmatmul.mubr.f32.vlgmr.msra.gmra.mrb[0].mxu0 %v406_v47  ;;  %1184 = vmatpush3.bf16.msra.mxu1 %v1183_v50  ;;  %v924_v50 = vld [vmem:[%s1963_s8] ss:$0 sm:$0xff] }
  0xc2   : > { %1099 = vmatprep.mubr.msk.f32.mxu0 %vm1551_vm0, %v1552_v1  ;;  %1209 = vmatprep.subr.bf16.mxu1 %v1550_v0 }
  0xc3   : > { %1187 = vmatpush3.bf16.msra.mxu0 %v1186_v54 }
  0xc4   : > { %1188 = vmatprep.subr.bf16.mxu0 %v1550_v0 }
  0xc7   : > { %1190 = vmatpush3.bf16.msra.mxu0 %v1189_v56 }
  0xc8   : > { %1191 = vmatprep.subr.bf16.mxu0 %v1550_v0 }
  0xcb   : > { %1193 = vmatpush3.bf16.msra.mxu0 %v1192_v59 }
  0xcc   : > { %1194 = vmatprep.subr.bf16.mxu0 %v1550_v0 }
  0xcf   : > { %1196 = vmatpush3.bf16.msra.mxu0 %v1195_v62 }
  0xd0   : > { %1197 = vmatprep.subr.bf16.mxu0 %v1550_v0 }
  0xd3   : > { %1199 = vmatpush3.bf16.msra.mxu0 %v1198_v3 }
  0xd4   : > { %1200 = vmatprep.subr.bf16.mxu0 %v1550_v0 }
  0xd7   : > { %1202 = vmatpush3.bf16.msra.mxu0 %v1201_v6 }
  0xd8   : > { %1203 = vmatprep.subr.bf16.mxu0 %v1550_v0 }
  0xdb   : > { %1205 = vmatpush3.bf16.msra.mxu0 %v1204_v9 }
  0xdc   : > { %1206 = vmatprep.subr.bf16.mxu0 %v1550_v0 }
  0xdf   : > { %1208 = vmatpush3.bf16.msra.mxu0 %v1207_v17 }
 0x194   : > { %v496_v11 = vpop.f32.mrb[0].mxu0 }
 0x195   : > { %v497_v12 = vadd.f32 %v921_v10, %v496_v11  ;;  %v1031_v13 = vpop.f32.mrb[1].mxu0 }
 0x197   : > { %v500_v14 = vmax.f32 %v497_v12, 0.0 }
 0x199   : > { %1065 = vmatmul.mubr.f32.vlgmr.msra.gmra.mrb[0].mxu1 %v500_v14 }
 0x19a   : > { %1134 = vmatprep.mubr.msk.f32.mxu1 %vm1551_vm0, %v1552_v1  ;;  %1211 = vmatpush3.bf16.msra.mxu1 %v1210_v21  ;;  %v695_v1 = vld [vmem:[#allocation10 + $0x30] sm:$0xff] }
 0x19b   : > { %1212 = vmatprep.subr.bf16.mxu1 %v1550_v0  ;;  %v1219_v28 = vpack.c.bf16 %v696_v27, %v695_v1 }
 0x19e   : > { %1214 = vmatpush3.bf16.msra.mxu1 %v1213_v23 }
 0x19f   : > { %1215 = vmatprep.subr.bf16.mxu1 %v1550_v0 }
 0x1a2   : > { %1217 = vmatpush3.bf16.msra.mxu1 %v1216_v26 }
 0x1a3   : > { %1218 = vmatprep.subr.bf16.mxu1 %v1550_v0 }
 0x1a6   : > { %1220 = vmatpush3.bf16.msra.mxu1 %v1219_v28 }
 0x1a7   : > { %1221 = vmatprep.subr.bf16.mxu1 %v1550_v0 }
 0x1aa   : > { %1223 = vmatpush3.bf16.msra.mxu1 %v1222_v31 }
 0x1ab   : > { %1224 = vmatprep.subr.bf16.mxu1 %v1550_v0 }
 0x1ae   : > { %1226 = vmatpush3.bf16.msra.mxu1 %v1225_v34 }
 0x1af   : > { %1227 = vmatprep.subr.bf16.mxu1 %v1550_v0 }
 0x1b2   : > { %1229 = vmatpush3.bf16.msra.mxu1 %v1228_v37 }
 0x1b3   : > { %1230 = vmatprep.subr.bf16.mxu1 %v1550_v0 }
 0x1b6   : > { %1232 = vmatpush3.bf16.msra.mxu1 %v1231_v45 }
 0x26c   : > { %v590_v39 = vpop.f32.mrb[0].mxu1 }
 0x26d   : > { %v591_v40 = vadd.f32 %v922_v38, %v590_v39  ;;  %v1066_v41 = vpop.f32.mrb[1].mxu1 }
 0x26f   : > { %v594_v42 = vmax.f32 %v591_v40, 0.0 }
 0x271   : > { %1100 = vmatmul.mubr.f32.vlgmr.msra.gmra.mrb[2].mxu0 %v594_v42 }
 0x344   : > { %v684_v0 = vpop.f32.mrb[2].mxu0 }
 0x345   : > { %v685_v47 = vadd.f32 %v923_v46, %v684_v0  ;;  %v1101_v48 = vpop.f32.mrb[3].mxu0 }
 0x347   : > { %v688_v49 = vmax.f32 %v685_v47, 0.0 }
 0x349   : > { %1135 = vmatmul.mubr.f32.vlgmr.msra.gmra.mrb[2].mxu1 %v688_v49 }
 0x41c   : > { %v778_v51 = vpop.f32.mrb[2].mxu1 }
 0x41d   : > { %v779_v52 = vadd.f32 %v924_v50, %v778_v51  ;;  %v1136_v53 = vpop.f32.mrb[3].mxu1 }
 0x41f   : > { %782 = vst [vmem:[%s405_s13] sm:$0xff] %v779_v52 }
 0x420   : > { %1480 = shalt.err (!%p1477_p0)
}
 0x421   : > { %s1481_s1 = scalar_lea.hbm %s1911_s14, 128  ;;  %s1485_s29 = scalar_lea.hbm %s1986_s17, 256 }
 0x422   : > { %p1482_p2 = scmp.ne.s32.totalorder %s1911_s14, %s1481_s1  ;;  %p1486_p10 = scmp.lt.u32.totalorder %s1911_s14, %s1986_s17 }
 0x423   : > { %p1487_p11 = scmp.lt.u32.totalorder %s1485_s29, %s1481_s1  ;;  %p1489_p6 = scmp.lt.u32.totalorder %s1481_s1, %s1911_s14 }
 0x424   : > { %p1483_p8 = pnand %p1482_p2, %p1987_p5 }
 0x425   : > { %p1488_p1 = por %p1487_p11, %p1486_p10 }
 0x426   : > { %p1484_p4 = pneg %p1483_p8 }
 0x427   : > { %p1490_p7 = por %p1489_p6, %p1488_p1 }
 0x429   : > { %p1491_p9 = pnand %p1490_p7, %p1484_p4 }
 0x42b   : > { %1494 = shalt.err (!%p1491_p9)
}
 0x42c   : > { %1251 = dma.vmem_to_hbm [thread:$0]  (%p1987_p5), %s1913_s26, 128, %s1911_s14, %s784_s19  }
 0x42d PF: > { %s809_s16 = sand.u32 1, %s1529_s30   ;;  %p1988_p12 = scmp.ne.s32.totalorder %s1979_s28, 0 }
 0x42e   : > { %p1989_p3 = scmp.ge.s32.totalorder %s1541_s12, 2  ;;  %s810_s22 = scalar_lea.sflag [#allocation4], %s809_s16 }
 0x430   : > { %p1271_p13 = pnand %p1989_p3, %p1988_p12 }
 0x432   : > { %1524 = dma.done.wait (!%p1271_p13), %s810_s22, 128  }
 0x433   : > { %1526 = vsyncadd (!%p1271_p13), %s810_s22, 4294967168  ;;  %p24_p0 = scmp.ge.s32.totalorder %s1756_s27, 4   ;;  %s1990_s30 = smov %s1533_s10 }
 0x434   : > { %s1991_s10 = smov %s1537_s11  ;;  %s1992_s11 = smov %s1767_s25 }
 0x435   : > { %s1993_s12 = smov %s1756_s27  ;;  %26 = sbr.rel (!%p24_p0) target bundleno = 10 (0xa), region = 117 }
 0x43c   :  { %815 = vsyncpa [#allocation3], 1 }
 0x43d   :  { %817 = vsyncpa [#allocation3 + $0x1], 1 }
 0x43e   :  { %818 = vsyncpa [#allocation6], 1 }
 0x43f   :  { %819 = vsyncpa [#allocation9], 1 }
 0x440   :  { %820 = vsyncpa [#allocation4], 1 }
 0x441   :  { %822 = vsyncpa [#allocation4 + $0x1], 1 }

</bundles_post_ra>
